<compile_context>
chip_gen: v7x
topology: tpu7x:2x2x1
jax: 0.10.0
libtpu: 0.0.40
codegen_flags: <defaults>
</compile_context>

<pallas_src>
import math
import functools

import jax
import jax.numpy as jnp
from jax import lax
from jax.experimental import pallas as pl
from jax.experimental.pallas import tpu as pltpu

EMBED_DIM = 32
NUM_HEADS = 4
HEAD_DIM = EMBED_DIM // NUM_HEADS
SEQ = 8
BSZ = 2


# ----------------------------- Fused Pallas kernel -------------------------

def _mha_kernel(q_ref, k_ref, v_ref, w_ref, b_ref, o_ref, *, num_heads):
    """One batch element per grid step: projections + all heads + out-proj.

    q_ref : (T, E) bf16      k_ref / v_ref : (S, E) bf16
    w_ref : (4, E, E) bf16   rows = [Wq*scale, Wk, Wv, Wo], each (in, out)
    b_ref : (4, E)  f32      rows = [bq*scale, bk, bv, bo]
    o_ref : (T, E)  f32
    """
    f32 = jnp.float32
    bf16 = jnp.bfloat16
    T, E = q_ref.shape
    D = E // num_heads

    # ---- Q/K/V projections (MXU: bf16 operands, f32 accumulate) ----
    q = jnp.dot(q_ref[...], w_ref[0], preferred_element_type=f32) + b_ref[0:1, :]
    k = jnp.dot(k_ref[...], w_ref[1], preferred_element_type=f32) + b_ref[1:2, :]
    v = jnp.dot(v_ref[...], w_ref[2], preferred_element_type=f32) + b_ref[2:3, :]
    qb = q.astype(bf16)
    kb = k.astype(bf16)
    vb = v.astype(bf16)
    wo = w_ref[3]                                             # (E, E) bf16

    # ---- per-head attention with the output projection folded in ----
    acc = jnp.zeros((T, E), f32)
    for h in range(num_heads):                                # static unroll
        sl = slice(h * D, (h + 1) * D)
        # scores = q_h @ k_h^T via dot_general (no explicit transpose)
        s = lax.dot_general(qb[:, sl], kb[:, sl],
                            (((1,), (1,)), ((), ())),
                            preferred_element_type=f32)       # (T, S) f32
        m = jnp.max(s, axis=-1, keepdims=True)
        p = jnp.exp(s - m)                                    # f32
        l = jnp.sum(p, axis=-1, keepdims=True)                # f32 row sums
        oh = jnp.dot(p.astype(bf16), vb[:, sl],
                     preferred_element_type=f32)              # (T, D) f32
        # deferred normalization, in f32, after the bf16 PV matmul
        oh = oh * pl.reciprocal(l, approx=True)
        # fold output projection: accumulate this head's contribution
        acc = acc + jnp.dot(oh.astype(bf16), wo[sl, :],
                            preferred_element_type=f32)       # (T, E) f32

    o_ref[...] = (acc + b_ref[3:4, :]).astype(o_ref.dtype)


# ------------------------------- Module glue -------------------------------

def init_params(key, embed_dim=EMBED_DIM):
    """Deterministic init mirroring MultiheadAttention.reset_parameters()."""
    ks = jax.random.split(key, 8)

    def xavier_uniform(k, shape, gain=1.0):
        fan_out, fan_in = shape
        bound = gain * math.sqrt(6.0 / (fan_in + fan_out))
        return jax.random.uniform(k, shape, jnp.float32, -bound, bound)

    def linear_bias(k, fan_in, n):
        bound = 1.0 / math.sqrt(fan_in)
        return jax.random.uniform(k, (n,), jnp.float32, -bound, bound)

    g = 1.0 / math.sqrt(2.0)  # qkv_same_dim=True
    return {
        "q_w": xavier_uniform(ks[0], (embed_dim, embed_dim), g),
        "k_w": xavier_uniform(ks[1], (embed_dim, embed_dim), g),
        "v_w": xavier_uniform(ks[2], (embed_dim, embed_dim), g),
        "o_w": xavier_uniform(ks[3], (embed_dim, embed_dim), 1.0),
        "q_b": linear_bias(ks[4], embed_dim, embed_dim),
        "k_b": linear_bias(ks[5], embed_dim, embed_dim),
        "v_b": linear_bias(ks[6], embed_dim, embed_dim),
        "o_b": jnp.zeros((embed_dim,), jnp.float32),  # out_proj.bias init to 0
    }


def pack_params(params, num_heads=NUM_HEADS):
    """One-time re-layout: all weights in one (4,E,E) bf16 array (transposed
    to (in,out), Wq/bq pre-scaled by head_dim**-0.5), all biases in one
    (4,E) f32 array.  Two kernel operands instead of eight."""
    E = params["q_w"].shape[0]
    scaling = (E // num_heads) ** (-0.5)
    w = jnp.stack(
        [
            (params["q_w"].T * scaling).astype(jnp.bfloat16),
            params["k_w"].T.astype(jnp.bfloat16),
            params["v_w"].T.astype(jnp.bfloat16),
            params["o_w"].T.astype(jnp.bfloat16),
        ],
        axis=0,
    )  # (4, E, E) bf16
    b = jnp.stack(
        [
            params["q_b"] * scaling,
            params["k_b"],
            params["v_b"],
            params["o_b"],
        ],
        axis=0,
    ).astype(jnp.float32)  # (4, E) f32
    return {"w": w, "b": b}


@functools.partial(jax.jit, static_argnames=("num_heads",))
def multihead_attention(query, key, value, packed, num_heads=NUM_HEADS):
    """query/key/value: (seq_len, batch, embed_dim) f32. Returns (out, None)."""
    T, B, E = query.shape
    S = key.shape[0]

    # Batch-contiguous, bf16 MXU operands (tiny one-shot relayout in XLA;
    # removes all in-kernel batch-masking / redundant cross-batch work).
    q_bt = jnp.transpose(query, (1, 0, 2)).astype(jnp.bfloat16)  # (B, T, E)
    k_bt = jnp.transpose(key, (1, 0, 2)).astype(jnp.bfloat16)    # (B, S, E)
    v_bt = jnp.transpose(value, (1, 0, 2)).astype(jnp.bfloat16)  # (B, S, E)

    kernel = functools.partial(_mha_kernel, num_heads=num_heads)
    out_bt = pl.pallas_call(
        kernel,
        out_shape=jax.ShapeDtypeStruct((B, T, E), jnp.float32),
        grid=(B,),
        in_specs=[
            pl.BlockSpec((None, T, E), lambda b: (b, 0, 0)),   # q  (per batch)
            pl.BlockSpec((None, S, E), lambda b: (b, 0, 0)),   # k
            pl.BlockSpec((None, S, E), lambda b: (b, 0, 0)),   # v
            pl.BlockSpec((4, E, E), lambda b: (0, 0, 0)),      # packed weights
            pl.BlockSpec((4, E), lambda b: (0, 0)),            # packed biases
        ],
        out_specs=pl.BlockSpec((None, T, E), lambda b: (b, 0, 0)),
        compiler_params=pltpu.CompilerParams(
            dimension_semantics=("parallel",),   # batch axis -> 2 TCs on v7x
            vmem_limit_bytes=32 * 1024 * 1024,
        ),
    )(q_bt, k_bt, v_bt, packed["w"], packed["b"])

    # (B, T, E) -> (T, B, E); need_weights=False -> no attention weights.
    return jnp.transpose(out_bt, (1, 0, 2)), None


def _reference(query, key, value, params):
    """Plain-JAX f32 reference for a sanity check."""
    T, B, E = query.shape
    S = key.shape[0]
    H, D = NUM_HEADS, HEAD_DIM
    q = (query.reshape(T * B, E) @ params["q_w"].T + params["q_b"]) * (D ** -0.5)
    k = key.reshape(S * B, E) @ params["k_w"].T + params["k_b"]
    v = value.reshape(S * B, E) @ params["v_w"].T + params["v_b"]
    q = q.reshape(T, B, H, D).transpose(1, 2, 0, 3).reshape(B * H, T, D)
    k = k.reshape(S, B, H, D).transpose(1, 2, 0, 3).reshape(B * H, S, D)
    v = v.reshape(S, B, H, D).transpose(1, 2, 0, 3).reshape(B * H, S, D)
    s = jnp.einsum("btd,bsd->bts", q, k)
    p = jax.nn.softmax(s, axis=-1)
    ctx = jnp.einsum("bts,bsd->btd", p, v)
    ctx = ctx.reshape(B, H, T, D).transpose(2, 0, 1, 3).reshape(T * B, E)
    return (ctx @ params["o_w"].T + params["o_b"]).reshape(T, B, E)


if __name__ == "__main__":
    root = jax.random.PRNGKey(0)
    k_p, k_q, k_k, k_v = jax.random.split(root, 4)

    params = init_params(k_p)
    packed = pack_params(params, NUM_HEADS)

    # self-attention style inputs: query == key == value shapes (T, B, E)
    query = jax.random.normal(k_q, (SEQ, BSZ, EMBED_DIM), jnp.float32)
    key = jax.random.normal(k_k, (SEQ, BSZ, EMBED_DIM), jnp.float32)
    value = jax.random.normal(k_v, (SEQ, BSZ, EMBED_DIM), jnp.float32)

    out, attn_w = multihead_attention(query, key, value, packed, num_heads=NUM_HEADS)
    out = jax.block_until_ready(out)

    ref = _reference(query, key, value, params)
    assert out.shape == (SEQ, BSZ, EMBED_DIM)
    assert attn_w is None
    # bf16 MXU operands + approx reciprocal -> loosened tolerance (softmax
    # normalization is now done in f32, so this is conservative).
    max_err = float(jnp.max(jnp.abs(out - ref)))
    assert jnp.allclose(out, ref, atol=2e-2, rtol=2e-2), f"mismatch vs reference (max abs err={max_err})"

    # TODO(synk): key_padding_mask / attn_mask / dropout(training) / incremental
    # decoding paths are not exercised by the default forward call and are omitted.
    print("KERNEL_OK")
</pallas_src>

<mosaic_0001>
module attributes {stable_mosaic.version = 11 : i64} {
  func.func @_mha_kernel(%arg0: i32, %arg1: memref<1x8x32xbf16, #tpu.memory_space<vmem>>, %arg2: memref<1x8x32xbf16, #tpu.memory_space<vmem>>, %arg3: memref<1x8x32xbf16, #tpu.memory_space<vmem>>, %arg4: memref<4x32x32xbf16, #tpu.memory_space<vmem>>, %arg5: memref<4x32xf32, #tpu.memory_space<vmem>>, %arg6: memref<1x8x32xf32, #tpu.memory_space<vmem>>) attributes {dimension_semantics = [#tpu.dimension_semantics<parallel>], iteration_bounds = array<i64: 2>, scalar_prefetch = 0 : i64, scratch_operands = 0 : i64, tpu.core_type = #tpu.core_type<tc>, window_params = [{transform_indices = @transform_0, window_bounds = array<i64: 1, 8, 32>}, {transform_indices = @transform_1, window_bounds = array<i64: 1, 8, 32>}, {transform_indices = @transform_2, window_bounds = array<i64: 1, 8, 32>}, {pipeline_mode = #tpu.pipeline_mode<synchronous>, transform_indices = @transform_3, window_bounds = array<i64: 4, 32, 32>}, {pipeline_mode = #tpu.pipeline_mode<synchronous>, transform_indices = @transform_4, window_bounds = array<i64: 4, 32>}, {transform_indices = @transform_5, window_bounds = array<i64: 1, 8, 32>}]} {
    %c0 = arith.constant 0 : index
    %c0_0 = arith.constant 0 : index
    %c0_1 = arith.constant 0 : index
    %0 = vector.load %arg1[%c0, %c0_0, %c0_1] : memref<1x8x32xbf16, #tpu.memory_space<vmem>>, vector<1x8x32xbf16>
    %1 = vector.shape_cast %0 : vector<1x8x32xbf16> to vector<8x32xbf16>
    %c0_2 = arith.constant 0 : index
    %c0_3 = arith.constant 0 : index
    %c0_4 = arith.constant 0 : index
    %2 = vector.load %arg4[%c0_2, %c0_3, %c0_4] : memref<4x32x32xbf16, #tpu.memory_space<vmem>>, vector<1x32x32xbf16>
    %3 = vector.shape_cast %2 : vector<1x32x32xbf16> to vector<32x32xbf16>
    %cst = arith.constant dense<0.000000e+00> : vector<8x32xf32>
    %4 = tpu.matmul %1, %3, %cst {dimension_numbers = #tpu.dot_dimension_numbers<[1], [0], [0], [1], [0, 0, 1, 1], [], []>} : vector<8x32xbf16>, vector<32x32xbf16>, vector<8x32xf32> -> vector<8x32xf32>
    %c0_5 = arith.constant 0 : index
    %c0_6 = arith.constant 0 : index
    %5 = vector.load %arg5[%c0_5, %c0_6] : memref<4x32xf32, #tpu.memory_space<vmem>>, vector<1x32xf32>
    %6 = vector.broadcast %5 : vector<1x32xf32> to vector<8x32xf32>
    %7 = arith.addf %4, %6 : vector<8x32xf32>
    %c0_7 = arith.constant 0 : index
    %c0_8 = arith.constant 0 : index
    %c0_9 = arith.constant 0 : index
    %8 = vector.load %arg2[%c0_7, %c0_8, %c0_9] : memref<1x8x32xbf16, #tpu.memory_space<vmem>>, vector<1x8x32xbf16>
    %9 = vector.shape_cast %8 : vector<1x8x32xbf16> to vector<8x32xbf16>
    %c1 = arith.constant 1 : index
    %c0_10 = arith.constant 0 : index
    %c0_11 = arith.constant 0 : index
    %10 = vector.load %arg4[%c1, %c0_10, %c0_11] : memref<4x32x32xbf16, #tpu.memory_space<vmem>>, vector<1x32x32xbf16>
    %11 = vector.shape_cast %10 : vector<1x32x32xbf16> to vector<32x32xbf16>
    %cst_12 = arith.constant dense<0.000000e+00> : vector<8x32xf32>
    %12 = tpu.matmul %9, %11, %cst_12 {dimension_numbers = #tpu.dot_dimension_numbers<[1], [0], [0], [1], [0, 0, 1, 1], [], []>} : vector<8x32xbf16>, vector<32x32xbf16>, vector<8x32xf32> -> vector<8x32xf32>
    %c1_13 = arith.constant 1 : index
    %c0_14 = arith.constant 0 : index
    %13 = vector.load %arg5[%c1_13, %c0_14] : memref<4x32xf32, #tpu.memory_space<vmem>>, vector<1x32xf32>
    %14 = vector.broadcast %13 : vector<1x32xf32> to vector<8x32xf32>
    %15 = arith.addf %12, %14 : vector<8x32xf32>
    %c0_15 = arith.constant 0 : index
    %c0_16 = arith.constant 0 : index
    %c0_17 = arith.constant 0 : index
    %16 = vector.load %arg3[%c0_15, %c0_16, %c0_17] : memref<1x8x32xbf16, #tpu.memory_space<vmem>>, vector<1x8x32xbf16>
    %17 = vector.shape_cast %16 : vector<1x8x32xbf16> to vector<8x32xbf16>
    %c2 = arith.constant 2 : index
    %c0_18 = arith.constant 0 : index
    %c0_19 = arith.constant 0 : index
    %18 = vector.load %arg4[%c2, %c0_18, %c0_19] : memref<4x32x32xbf16, #tpu.memory_space<vmem>>, vector<1x32x32xbf16>
    %19 = vector.shape_cast %18 : vector<1x32x32xbf16> to vector<32x32xbf16>
    %cst_20 = arith.constant dense<0.000000e+00> : vector<8x32xf32>
    %20 = tpu.matmul %17, %19, %cst_20 {dimension_numbers = #tpu.dot_dimension_numbers<[1], [0], [0], [1], [0, 0, 1, 1], [], []>} : vector<8x32xbf16>, vector<32x32xbf16>, vector<8x32xf32> -> vector<8x32xf32>
    %c2_21 = arith.constant 2 : index
    %c0_22 = arith.constant 0 : index
    %21 = vector.load %arg5[%c2_21, %c0_22] : memref<4x32xf32, #tpu.memory_space<vmem>>, vector<1x32xf32>
    %22 = vector.broadcast %21 : vector<1x32xf32> to vector<8x32xf32>
    %23 = arith.addf %20, %22 : vector<8x32xf32>
    %24 = arith.truncf %7 : vector<8x32xf32> to vector<8x32xbf16>
    %25 = arith.truncf %15 : vector<8x32xf32> to vector<8x32xbf16>
    %26 = arith.truncf %23 : vector<8x32xf32> to vector<8x32xbf16>
    %c3 = arith.constant 3 : index
    %c0_23 = arith.constant 0 : index
    %c0_24 = arith.constant 0 : index
    %27 = vector.load %arg4[%c3, %c0_23, %c0_24] : memref<4x32x32xbf16, #tpu.memory_space<vmem>>, vector<1x32x32xbf16>
    %28 = vector.shape_cast %27 : vector<1x32x32xbf16> to vector<32x32xbf16>
    %cst_25 = arith.constant 0.000000e+00 : f32
    %29 = vector.broadcast %cst_25 : f32 to vector<8x32xf32>
    %30 = vector.extract_strided_slice %24 {offsets = [0, 0], sizes = [8, 8], strides = [1, 1]} : vector<8x32xbf16> to vector<8x8xbf16>
    %31 = vector.extract_strided_slice %25 {offsets = [0, 0], sizes = [8, 8], strides = [1, 1]} : vector<8x32xbf16> to vector<8x8xbf16>
    %cst_26 = arith.constant dense<0.000000e+00> : vector<8x8xf32>
    %32 = tpu.matmul %30, %31, %cst_26 {dimension_numbers = #tpu.dot_dimension_numbers<[1], [1], [0], [0], [0, 0, 1, 0], [], []>} : vector<8x8xbf16>, vector<8x8xbf16>, vector<8x8xf32> -> vector<8x8xf32>
    %cst_27 = arith.constant dense<0xFF800000> : vector<8xf32>
    %33 = vector.multi_reduction <maximumf>, %32, %cst_27 [1] : vector<8x8xf32> to vector<8xf32>
    %34 = vector.shape_cast %33 : vector<8xf32> to vector<8x1xf32>
    %35 = vector.broadcast %34 : vector<8x1xf32> to vector<8x8xf32>
    %36 = arith.subf %32, %35 : vector<8x8xf32>
    %37 = math.exp %36 : vector<8x8xf32>
    %cst_28 = arith.constant dense<0.000000e+00> : vector<8xf32>
    %38 = vector.multi_reduction <add>, %37, %cst_28 [1] : vector<8x8xf32> to vector<8xf32>
    %39 = vector.shape_cast %38 : vector<8xf32> to vector<8x1xf32>
    %40 = arith.truncf %37 : vector<8x8xf32> to vector<8x8xbf16>
    %41 = vector.extract_strided_slice %26 {offsets = [0, 0], sizes = [8, 8], strides = [1, 1]} : vector<8x32xbf16> to vector<8x8xbf16>
    %cst_29 = arith.constant dense<0.000000e+00> : vector<8x8xf32>
    %42 = tpu.matmul %40, %41, %cst_29 {dimension_numbers = #tpu.dot_dimension_numbers<[1], [0], [0], [1], [0, 0, 1, 1], [], []>} : vector<8x8xbf16>, vector<8x8xbf16>, vector<8x8xf32> -> vector<8x8xf32>
    %43 = tpu.reciprocal %39 {approx = true} : vector<8x1xf32> -> vector<8x1xf32>
    %44 = vector.broadcast %43 : vector<8x1xf32> to vector<8x8xf32>
    %45 = arith.mulf %42, %44 : vector<8x8xf32>
    %46 = arith.truncf %45 : vector<8x8xf32> to vector<8x8xbf16>
    %47 = vector.extract_strided_slice %28 {offsets = [0, 0], sizes = [8, 32], strides = [1, 1]} : vector<32x32xbf16> to vector<8x32xbf16>
    %cst_30 = arith.constant dense<0.000000e+00> : vector<8x32xf32>
    %48 = tpu.matmul %46, %47, %cst_30 {dimension_numbers = #tpu.dot_dimension_numbers<[1], [0], [0], [1], [0, 0, 1, 1], [], []>} : vector<8x8xbf16>, vector<8x32xbf16>, vector<8x32xf32> -> vector<8x32xf32>
    %49 = arith.addf %29, %48 : vector<8x32xf32>
    %50 = vector.extract_strided_slice %24 {offsets = [0, 8], sizes = [8, 8], strides = [1, 1]} : vector<8x32xbf16> to vector<8x8xbf16>
    %51 = vector.extract_strided_slice %25 {offsets = [0, 8], sizes = [8, 8], strides = [1, 1]} : vector<8x32xbf16> to vector<8x8xbf16>
    %cst_31 = arith.constant dense<0.000000e+00> : vector<8x8xf32>
    %52 = tpu.matmul %50, %51, %cst_31 {dimension_numbers = #tpu.dot_dimension_numbers<[1], [1], [0], [0], [0, 0, 1, 0], [], []>} : vector<8x8xbf16>, vector<8x8xbf16>, vector<8x8xf32> -> vector<8x8xf32>
    %cst_32 = arith.constant dense<0xFF800000> : vector<8xf32>
    %53 = vector.multi_reduction <maximumf>, %52, %cst_32 [1] : vector<8x8xf32> to vector<8xf32>
    %54 = vector.shape_cast %53 : vector<8xf32> to vector<8x1xf32>
    %55 = vector.broadcast %54 : vector<8x1xf32> to vector<8x8xf32>
    %56 = arith.subf %52, %55 : vector<8x8xf32>
    %57 = math.exp %56 : vector<8x8xf32>
    %cst_33 = arith.constant dense<0.000000e+00> : vector<8xf32>
    %58 = vector.multi_reduction <add>, %57, %cst_33 [1] : vector<8x8xf32> to vector<8xf32>
    %59 = vector.shape_cast %58 : vector<8xf32> to vector<8x1xf32>
    %60 = arith.truncf %57 : vector<8x8xf32> to vector<8x8xbf16>
    %61 = vector.extract_strided_slice %26 {offsets = [0, 8], sizes = [8, 8], strides = [1, 1]} : vector<8x32xbf16> to vector<8x8xbf16>
    %cst_34 = arith.constant dense<0.000000e+00> : vector<8x8xf32>
    %62 = tpu.matmul %60, %61, %cst_34 {dimension_numbers = #tpu.dot_dimension_numbers<[1], [0], [0], [1], [0, 0, 1, 1], [], []>} : vector<8x8xbf16>, vector<8x8xbf16>, vector<8x8xf32> -> vector<8x8xf32>
    %63 = tpu.reciprocal %59 {approx = true} : vector<8x1xf32> -> vector<8x1xf32>
    %64 = vector.broadcast %63 : vector<8x1xf32> to vector<8x8xf32>
    %65 = arith.mulf %62, %64 : vector<8x8xf32>
    %66 = arith.truncf %65 : vector<8x8xf32> to vector<8x8xbf16>
    %67 = vector.extract_strided_slice %28 {offsets = [8, 0], sizes = [8, 32], strides = [1, 1]} : vector<32x32xbf16> to vector<8x32xbf16>
    %cst_35 = arith.constant dense<0.000000e+00> : vector<8x32xf32>
    %68 = tpu.matmul %66, %67, %cst_35 {dimension_numbers = #tpu.dot_dimension_numbers<[1], [0], [0], [1], [0, 0, 1, 1], [], []>} : vector<8x8xbf16>, vector<8x32xbf16>, vector<8x32xf32> -> vector<8x32xf32>
    %69 = arith.addf %49, %68 : vector<8x32xf32>
    %70 = vector.extract_strided_slice %24 {offsets = [0, 16], sizes = [8, 8], strides = [1, 1]} : vector<8x32xbf16> to vector<8x8xbf16>
    %71 = vector.extract_strided_slice %25 {offsets = [0, 16], sizes = [8, 8], strides = [1, 1]} : vector<8x32xbf16> to vector<8x8xbf16>
    %cst_36 = arith.constant dense<0.000000e+00> : vector<8x8xf32>
    %72 = tpu.matmul %70, %71, %cst_36 {dimension_numbers = #tpu.dot_dimension_numbers<[1], [1], [0], [0], [0, 0, 1, 0], [], []>} : vector<8x8xbf16>, vector<8x8xbf16>, vector<8x8xf32> -> vector<8x8xf32>
    %cst_37 = arith.constant dense<0xFF800000> : vector<8xf32>
    %73 = vector.multi_reduction <maximumf>, %72, %cst_37 [1] : vector<8x8xf32> to vector<8xf32>
    %74 = vector.shape_cast %73 : vector<8xf32> to vector<8x1xf32>
    %75 = vector.broadcast %74 : vector<8x1xf32> to vector<8x8xf32>
    %76 = arith.subf %72, %75 : vector<8x8xf32>
    %77 = math.exp %76 : vector<8x8xf32>
    %cst_38 = arith.constant dense<0.000000e+00> : vector<8xf32>
    %78 = vector.multi_reduction <add>, %77, %cst_38 [1] : vector<8x8xf32> to vector<8xf32>
    %79 = vector.shape_cast %78 : vector<8xf32> to vector<8x1xf32>
    %80 = arith.truncf %77 : vector<8x8xf32> to vector<8x8xbf16>
    %81 = vector.extract_strided_slice %26 {offsets = [0, 16], sizes = [8, 8], strides = [1, 1]} : vector<8x32xbf16> to vector<8x8xbf16>
    %cst_39 = arith.constant dense<0.000000e+00> : vector<8x8xf32>
    %82 = tpu.matmul %80, %81, %cst_39 {dimension_numbers = #tpu.dot_dimension_numbers<[1], [0], [0], [1], [0, 0, 1, 1], [], []>} : vector<8x8xbf16>, vector<8x8xbf16>, vector<8x8xf32> -> vector<8x8xf32>
    %83 = tpu.reciprocal %79 {approx = true} : vector<8x1xf32> -> vector<8x1xf32>
    %84 = vector.broadcast %83 : vector<8x1xf32> to vector<8x8xf32>
    %85 = arith.mulf %82, %84 : vector<8x8xf32>
    %86 = arith.truncf %85 : vector<8x8xf32> to vector<8x8xbf16>
    %87 = vector.extract_strided_slice %28 {offsets = [16, 0], sizes = [8, 32], strides = [1, 1]} : vector<32x32xbf16> to vector<8x32xbf16>
    %cst_40 = arith.constant dense<0.000000e+00> : vector<8x32xf32>
    %88 = tpu.matmul %86, %87, %cst_40 {dimension_numbers = #tpu.dot_dimension_numbers<[1], [0], [0], [1], [0, 0, 1, 1], [], []>} : vector<8x8xbf16>, vector<8x32xbf16>, vector<8x32xf32> -> vector<8x32xf32>
    %89 = arith.addf %69, %88 : vector<8x32xf32>
    %90 = vector.extract_strided_slice %24 {offsets = [0, 24], sizes = [8, 8], strides = [1, 1]} : vector<8x32xbf16> to vector<8x8xbf16>
    %91 = vector.extract_strided_slice %25 {offsets = [0, 24], sizes = [8, 8], strides = [1, 1]} : vector<8x32xbf16> to vector<8x8xbf16>
    %cst_41 = arith.constant dense<0.000000e+00> : vector<8x8xf32>
    %92 = tpu.matmul %90, %91, %cst_41 {dimension_numbers = #tpu.dot_dimension_numbers<[1], [1], [0], [0], [0, 0, 1, 0], [], []>} : vector<8x8xbf16>, vector<8x8xbf16>, vector<8x8xf32> -> vector<8x8xf32>
    %cst_42 = arith.constant dense<0xFF800000> : vector<8xf32>
    %93 = vector.multi_reduction <maximumf>, %92, %cst_42 [1] : vector<8x8xf32> to vector<8xf32>
    %94 = vector.shape_cast %93 : vector<8xf32> to vector<8x1xf32>
    %95 = vector.broadcast %94 : vector<8x1xf32> to vector<8x8xf32>
    %96 = arith.subf %92, %95 : vector<8x8xf32>
    %97 = math.exp %96 : vector<8x8xf32>
    %cst_43 = arith.constant dense<0.000000e+00> : vector<8xf32>
    %98 = vector.multi_reduction <add>, %97, %cst_43 [1] : vector<8x8xf32> to vector<8xf32>
    %99 = vector.shape_cast %98 : vector<8xf32> to vector<8x1xf32>
    %100 = arith.truncf %97 : vector<8x8xf32> to vector<8x8xbf16>
    %101 = vector.extract_strided_slice %26 {offsets = [0, 24], sizes = [8, 8], strides = [1, 1]} : vector<8x32xbf16> to vector<8x8xbf16>
    %cst_44 = arith.constant dense<0.000000e+00> : vector<8x8xf32>
    %102 = tpu.matmul %100, %101, %cst_44 {dimension_numbers = #tpu.dot_dimension_numbers<[1], [0], [0], [1], [0, 0, 1, 1], [], []>} : vector<8x8xbf16>, vector<8x8xbf16>, vector<8x8xf32> -> vector<8x8xf32>
    %103 = tpu.reciprocal %99 {approx = true} : vector<8x1xf32> -> vector<8x1xf32>
    %104 = vector.broadcast %103 : vector<8x1xf32> to vector<8x8xf32>
    %105 = arith.mulf %102, %104 : vector<8x8xf32>
    %106 = arith.truncf %105 : vector<8x8xf32> to vector<8x8xbf16>
    %107 = vector.extract_strided_slice %28 {offsets = [24, 0], sizes = [8, 32], strides = [1, 1]} : vector<32x32xbf16> to vector<8x32xbf16>
    %cst_45 = arith.constant dense<0.000000e+00> : vector<8x32xf32>
    %108 = tpu.matmul %106, %107, %cst_45 {dimension_numbers = #tpu.dot_dimension_numbers<[1], [0], [0], [1], [0, 0, 1, 1], [], []>} : vector<8x8xbf16>, vector<8x32xbf16>, vector<8x32xf32> -> vector<8x32xf32>
    %109 = arith.addf %89, %108 : vector<8x32xf32>
    %c3_46 = arith.constant 3 : index
    %c0_47 = arith.constant 0 : index
    %110 = vector.load %arg5[%c3_46, %c0_47] : memref<4x32xf32, #tpu.memory_space<vmem>>, vector<1x32xf32>
    %111 = vector.broadcast %110 : vector<1x32xf32> to vector<8x32xf32>
    %112 = arith.addf %109, %111 : vector<8x32xf32>
    %c0_48 = arith.constant 0 : index
    %c0_49 = arith.constant 0 : index
    %c0_50 = arith.constant 0 : index
    %113 = vector.load %arg6[%c0_48, %c0_49, %c0_50] : memref<1x8x32xf32, #tpu.memory_space<vmem>>, vector<1x8x32xf32>
    %114 = vector.shape_cast %113 : vector<1x8x32xf32> to vector<8x32xf32>
    %115 = vector.shape_cast %112 : vector<8x32xf32> to vector<1x8x32xf32>
    tpu.vector_store %arg6[%c0_48, %c0_49, %c0_50], %115 {strides = array<i32>} : memref<1x8x32xf32, #tpu.memory_space<vmem>>, vector<1x8x32xf32>,
    return
  }
  func.func @transform_0(%arg0: i32) -> (i32, i32, i32) {
    %c0_i32 = arith.constant 0 : i32
    %c0_i32_0 = arith.constant 0 : i32
    %c0_i32_1 = arith.constant 0 : i32
    return %arg0, %c0_i32, %c0_i32_0 : i32, i32, i32
  }
  func.func @transform_1(%arg0: i32) -> (i32, i32, i32) {
    %c0_i32 = arith.constant 0 : i32
    %c0_i32_0 = arith.constant 0 : i32
    %c0_i32_1 = arith.constant 0 : i32
    return %arg0, %c0_i32, %c0_i32_0 : i32, i32, i32
  }
  func.func @transform_2(%arg0: i32) -> (i32, i32, i32) {
    %c0_i32 = arith.constant 0 : i32
    %c0_i32_0 = arith.constant 0 : i32
    %c0_i32_1 = arith.constant 0 : i32
    return %arg0, %c0_i32, %c0_i32_0 : i32, i32, i32
  }
  func.func @transform_3(%arg0: i32) -> (i32, i32, i32) {
    %c0_i32 = arith.constant 0 : i32
    %c0_i32_0 = arith.constant 0 : i32
    %c0_i32_1 = arith.constant 0 : i32
    %c0_i32_2 = arith.constant 0 : i32
    return %c0_i32, %c0_i32_0, %c0_i32_1 : i32, i32, i32
  }
  func.func @transform_4(%arg0: i32) -> (i32, i32) {
    %c0_i32 = arith.constant 0 : i32
    %c0_i32_0 = arith.constant 0 : i32
    %c0_i32_1 = arith.constant 0 : i32
    return %c0_i32, %c0_i32_0 : i32, i32
  }
  func.func @transform_5(%arg0: i32) -> (i32, i32, i32) {
    %c0_i32 = arith.constant 0 : i32
    %c0_i32_0 = arith.constant 0 : i32
    %c0_i32_1 = arith.constant 0 : i32
    return %arg0, %c0_i32, %c0_i32_0 : i32, i32, i32
  }
}

</mosaic_0001>

<bundles_post_ra>
// kernel: multihead_attention.1
= control target key start
LH: loop header
LB: loop body
LE: loop exit
PB: predicated region body
PF: predicated region fallthrough
CT: control target
= control target key end

     0   :  { %s1429_s18 = smov 0   ;;  %s1609_s0 = inlined_call_operand.vmem [shape: bf16[2,8,32], index: 0, kind: input, shape index: {}]   ;;  %s1610_s1 = inlined_call_operand.vmem [shape: bf16[2,8,32], index: 1, kind: input, shape index: {}]   ;;  %s1611_s2 = inlined_call_operand.vmem [shape: bf16[2,8,32], index: 2, kind: input, shape index: {}]   ;;  %s1612_s3 = inlined_call_operand.vmem [shape: bf16[4,32,32], index: 3, kind: input, shape index: {}]   ;;  %s1613_s4 = inlined_call_operand.vmem [shape: f32[4,32], index: 4, kind: input, shape index: {}]   ;;  %s1614_s5 = inlined_call_operand.vmem [shape: f32[2,8,32], index: 5, kind: output, shape index: {}]  }
   0x1 LB: > { %s1174_s19 = sadd.s32 4294967295, %s1392_s18   ;;  %p1178_p0 = scmp.ge.s32.totalorder %s1392_s18, 1  ;;  %s1392_s18 = sphi %s1429_s18, %s15_s18  }
   0x2   : > { %p204_p1 = scmp.lt.s32.totalorder %s1392_s18, 3 }
   0x4   : > { %p205_p2 = pnand %p1178_p0, %p204_p1 }
   0x5   : > { %v1364_v0 = vld [vmem:[%s1612_s3] sm:$0xff] (!%p205_p2)   ;;  %v1394_v1 = vmov (!%p205_p2), 0.0   ;;  %v1365_v2 = vld [vmem:[%s1612_s3 + $0x10] sm:$0xff] (!%p205_p2)   ;;  %v1366_v3 = vld [vmem:[%s1612_s3 + $0x8] sm:$0xff] (!%p205_p2)   ;;  %vm1395_vm0 = vmmov (!%p205_p2), 0   ;;  %p238_p3 = scmp.lt.s32.totalorder (!%p205_p2), %s1174_s19, 1 }
   0x6   : > { %208 = sbr.rel (%p205_p2) target bundleno = 2138 (0x85a), region = 40  ;;  %1255 = vmatprep.subr.bf16.mxu0 (!%p205_p2), %v1394_v1  ;;  %1263 = vmatprep.subr.bf16.mxu1 (!%p205_p2), %v1394_v1  ;;  %v1367_v4 = vld [vmem:[%s1612_s3 + $0x18] sm:$0xff] (!%p205_p2)   ;;  %vm277_vm1 = vcmask (!%p205_p2), 261120   ;;  %v1368_v5 = vld [vmem:[%s1612_s3 + $0x20] sm:$0xff] (!%p205_p2)   ;;  %v1369_v8 = vld [vmem:[%s1612_s3 + $0x28] sm:$0xff] (!%p205_p2)   ;;  %vm461_vm2 = vcmask (!%p205_p2), 64512  }
   0x7   : > { %1256 = vmatpush3.bf16.msra.mxu0 (!%p205_p2), %v1364_v0  ;;  %1259 = vmatprep.mubr.msk.bf16.mxu0 (!%p205_p2), %vm1395_vm0, %v1394_v1  ;;  %v1191_v10 = vld [vmem:[%s1613_s4 + $0x1] ss:$0 sm:$0xff] (!%p205_p2)  ;;  %v1183_v11 = vld [vmem:[%s1613_s4] ss:$0 sm:$0xff] (!%p205_p2)  ;;  %s1396_s23 = smov (!%p205_p2), 120   ;;  %s1397_s26 = smov (!%p205_p2), 112  }
   0x8   : > { %1264 = vmatpush3.bf16.msra.mxu1 (!%p205_p2), %v1365_v2  ;;  %1257 = vmatprep.subr.bf16.mxu0 (!%p205_p2), %v1394_v1  ;;  %v1199_v25 = vld [vmem:[%s1613_s4 + $0x2] ss:$0 sm:$0xff] (!%p205_p2)  ;;  %vm521_vm3 = vcmask (!%p205_p2), 1043456   ;;  %s1398_s27 = smov (!%p205_p2), 104   ;;  %v1203_v57 = vld [vmem:[%s1612_s3 + $0x30] sm:$0xf] (!%p205_p2) }
   0x9   : > { %1265 = vmatprep.subr.bf16.mxu1 (!%p205_p2), %v1394_v1  ;;  %1267 = vmatprep.mubr.msk.bf16.mxu1 (!%p205_p2), %vm1395_vm0, %v1394_v1  ;;  %v732_v61 = vsel (!%p205_p2), %vm521_vm3, %v1203_v57, 0  ;;  %v1204_v62 = vld [vmem:[%s1612_s3 + $0x34] sm:$0xf] (!%p205_p2) }
   0xa   : > { %v686_v63 = vsel (!%p205_p2), %vm521_vm3, %v1204_v62, 0 }
   0xb   : > { %1258 = vmatpush3.bf16.msra.mxu0 (!%p205_p2), %v1366_v3 }
   0xc   : > { %1266 = vmatpush3.bf16.msra.mxu1 (!%p205_p2), %v1367_v4  ;;  %1271 = vmatprep.subr.bf16.mxu0 (!%p205_p2), %v1394_v1 }
   0xd   : > { %s1616_s19 = smov (!%p238_p3, %s1174_s19), 1  ;;  %1279 = vmatprep.subr.bf16.mxu1 %v1394_v1 }
   0xe   : > { %s1179_s28 = sshll.u32 %s1616_s19, 2 }
   0xf   : > { %s241_s8 = scalar_lea.vmem %s1609_s0, %s1179_s28  ;;  %s245_s11 = scalar_lea.vmem %s1610_s1, %s1179_s28 }
  0x10   : > { %v255_v6 = vld [vmem:[%s241_s8] sm:$0xf]  ;;  %s249_s16 = scalar_lea.vmem %s1611_s2, %s1179_s28 }
  0x11   : > { %v321_v7 = vld [vmem:[%s245_s11] sm:$0xf]  ;;  %1260 = vmatmul.mubr.msk.bf16.vlgmr.msra.gmra.mrb[0].mxu0 %vm277_vm1, %v255_v6  ;;  %s1182_s11 = sshll.u32 %s1616_s19, 3 }
  0x12   : > { %1268 = vmatmul.mubr.msk.bf16.vlgmr.msra.gmra.mrb[0].mxu1 %vm277_vm1, %v321_v7  ;;  %1272 = vmatpush3.bf16.msra.mxu0 %v1368_v5  ;;  %v387_v9 = vld [vmem:[%s249_s16] sm:$0xf]  ;;  %s253_s16 = scalar_lea.vmem %s1614_s5, %s1182_s11 }
  0x13   : > { %1273 = vmatprep.subr.bf16.mxu0 %v1394_v1  ;;  %1275 = vmatprep.mubr.msk.bf16.mxu0 %vm1395_vm0, %v1394_v1 }
  0x14   : > { %1281 = vmatprep.mubr.msk.bf16.mxu1 %vm1395_vm0, %v1394_v1 }
  0x16   : > { %1274 = vmatpush3.bf16.msra.mxu0 %v1369_v8 }
  0x17   : > { %1285 = vmatprep.subr.bf16.mxu0 %v1394_v1 }
  0x19   : > { %1276 = vmatmul.mubr.msk.bf16.vlgmr.msra.gmra.mrb[4].mxu0 %vm277_vm1, %v387_v9 }
  0x1a   : > { %1287 = vmatprep.mubr.msk.bf16.mxu0 %vm1395_vm0, %v1394_v1 }
  0xe4   : > { %v315_v12 = vpop.f32.mrb[0].mxu0 }
  0xe5   : > { %v381_v13 = vpop.f32.mrb[0].mxu1  ;;  %v1261_v14 = vpop.f32.mrb[1].mxu0  ;;  %v316_v17 = vadd.f32 %v1183_v11, %v315_v12 }
  0xe6   : > { %v382_v15 = vadd.f32 %v1191_v10, %v381_v13  ;;  %v1269_v16 = vpop.f32.mrb[1].mxu1  ;;  %v318_v18 = vpop.f32.mrb[2].mxu0 }
  0xe7   : > { %v384_v19 = vpop.f32.mrb[2].mxu1  ;;  %v1262_v20 = vpop.f32.mrb[3].mxu0  ;;  %v1496_v23 = vpack.c.bf16 %v316_v17, %v316_v17 }
  0xe8   : > { %v1494_v21 = vpack.c.bf16 %v382_v15, %v382_v15  ;;  %v1270_v22 = vpop.f32.mrb[3].mxu1 }
  0xea   : > { %572 = vrot.lane.b32.xlu0 %v1494_v21, %s1396_s23  ;;  %v466_v24 = vsel %vm461_vm2, %v1494_v21, 0 }
  0xeb   : > { %1280 = vmatpush3.bf16.xpose.msra.mxu1 %v466_v24 }
  0xec   : > { %v447_v26 = vpop.f32.mrb[4].mxu0  ;;  %1291 = vmatprep.subr.bf16.mxu1 %v1394_v1 }
  0xed   : > { %v448_v27 = vadd.f32 %v1199_v25, %v447_v26  ;;  %v1277_v28 = vpop.f32.mrb[5].mxu0 }
  0xee   : > { %569 = vrot.lane.b32.xlu0 %v1496_v23, %s1396_s23  ;;  %v450_v29 = vpop.f32.mrb[6].mxu0 }
  0xef   : > { %v1506_v30 = vpack.c.bf16 %v448_v27, %v448_v27  ;;  %v1278_v31 = vpop.f32.mrb[7].mxu0 }
  0xf1   : > { %v523_v40 = vsel %vm521_vm3, %v1506_v30, 0 }
  0xf2   : > { %1282 = vmatmul.mubr.msk.bf16.vlgmr.msra.gmra.mrb[4].mxu1 %vm461_vm2, %v1496_v23  ;;  %631 = vrot.lane.b32.xlu0 %v1506_v30, %s1396_s23 }
  0xf3   : > { %1293 = vmatprep.mubr.msk.bf16.mxu1 %vm1395_vm0, %v1394_v1  ;;  %1286 = vmatpush3.bf16.msra.mxu0 %v523_v40 }
  0xf4   : > { %1297 = vmatprep.subr.bf16.mxu0 %v1394_v1 }
  0xf6   : > { %776 = vrot.lane.b32.xlu0 %v1494_v21, %s1397_s26 }
 0x15c   : > { %v573_v32 = vpop.permute.xlu0 %572 }
 0x15d   : > { %v578_v33 = vsel %vm461_vm2, %v573_v32, 0 }
 0x15e   : > { %1292 = vmatpush3.bf16.xpose.msra.mxu1 %v578_v33 }
 0x15f   : > { %1303 = vmatprep.subr.bf16.mxu1 %v1394_v1 }
 0x160   : > { %v570_v34 = vpop.permute.xlu0 %569 }
 0x164   : > { %v632_v50 = vpop.permute.xlu0 %631 }
 0x165   : > { %1294 = vmatmul.mubr.msk.bf16.vlgmr.msra.gmra.mrb[8].mxu1 %vm461_vm2, %v570_v34  ;;  %v637_v51 = vsel %vm521_vm3, %v632_v50, 0 }
 0x166   : > { %1305 = vmatprep.mubr.msk.bf16.mxu1 %vm1395_vm0, %v1394_v1  ;;  %1304 = vmatpush3.bf16.msra.mxu1 %v686_v63 }
 0x167   : > { %1315 = vmatprep.subr.bf16.mxu1 %v1394_v1 }
 0x168   : > { %v777_v0 = vpop.permute.xlu0 %776 }
 0x169   : > { %v782_v20 = vsel %vm461_vm2, %v777_v0, 0 }
 0x1c5   : > { %v502_v35 = vpop.f32.mrb[4].mxu1 }
 0x1c6   : > { %v1283_v36 = vpop.f32.mrb[5].mxu1  ;;  %v508_v37 = vsel %vm461_vm2, %v502_v35, -inf }
 0x1c7   : > { %509 = vmax.xlane.f32.xlu1 %v508_v37  ;;  %v505_v38 = vpop.f32.mrb[6].mxu1 }
 0x1c8   : > { %v1284_v39 = vpop.f32.mrb[7].mxu1 }
 0x238   : > { %v614_v41 = vpop.f32.mrb[8].mxu1 }
 0x239   : > { %v1295_v42 = vpop.f32.mrb[9].mxu1  ;;  %v620_v43 = vsel %vm461_vm2, %v614_v41, -inf }
 0x23a   : > { %621 = vmax.xlane.f32.xlu1 %v620_v43  ;;  %v617_v44 = vpop.f32.mrb[10].mxu1 }
 0x23b   : > { %v1296_v45 = vpop.f32.mrb[11].mxu1 }
 0x254   : > { %v510_v46 = vpop.xlane.xlu1 %509 }
 0x255   : > { %v511_v47 = vsub.f32 %v502_v35, %v510_v46  ;;  %v1205_v46 = vld [vmem:[%s1612_s3 + $0x38] sm:$0xf] }
 0x257   : > { %v512_v48 = vmul.f32 1.442695, %v511_v47  ;;  %v889_v47 = vsel %vm521_vm3, %v1205_v46, 0 }
 0x259   : > { %1370 = vpow2.f32 %v512_v48 }
 0x263   : > { %v1371_v49 = vpop.eup %1370 }
 0x264   : > { %v514_v52 = vsel %vm461_vm2, %v1371_v49, 0.0  ;;  %v517_v53 = vpack.c.bf16 %v1371_v49, %v1371_v49 }
 0x265   : > { %515 = vadd.xlane.f32.xlu0 %v514_v52 }
 0x266   : > { %1288 = vmatmul.mubr.msk.bf16.vlgmr.msra.gmra.mrb[8].mxu0 %vm461_vm2, %v517_v53 }
 0x267   : > { %1298 = vmatpush3.bf16.msra.mxu0 %v637_v51  ;;  %1299 = vmatprep.mubr.msk.bf16.mxu0 %vm1395_vm0, %v1394_v1 }
 0x268   : > { %1309 = vmatprep.subr.bf16.mxu0 %v1394_v1 }
 0x27b   : > { %834 = vrot.lane.b32.xlu0 %v1506_v30, %s1397_s26 }
 0x27f   : > { %932 = vrot.lane.b32.xlu0 %v1496_v23, %s1398_s27 }
 0x2c7   : > { %v622_v54 = vpop.xlane.xlu1 %621 }
 0x2c8   : > { %v623_v55 = vsub.f32 %v614_v41, %v622_v54 }
 0x2ca   : > { %v624_v56 = vmul.f32 1.442695, %v623_v55 }
 0x2cc   : > { %1372 = vpow2.f32 %v624_v56 }
 0x2d6   : > { %v1373_v58 = vpop.eup %1372 }
 0x2d7   : > { %v626_v59 = vsel %vm461_vm2, %v1373_v58, 0.0  ;;  %v629_v60 = vpack.c.bf16 %v1373_v58, %v1373_v58 }
 0x2d8   : > { %627 = vadd.xlane.f32.xlu1 %v626_v59 }
 0x2d9   : > { %1300 = vmatmul.mubr.msk.bf16.vlgmr.msra.gmra.mrb[12].mxu0 %vm461_vm2, %v629_v60 }
 0x2da   : > { %1310 = vmatpush3.bf16.msra.mxu0 %v732_v61  ;;  %1311 = vmatprep.mubr.msk.bf16.mxu0 %vm1395_vm0, %v1394_v1 }
 0x2db   : > { %1321 = vmatprep.subr.bf16.mxu0 %v1394_v1 }
 0x2e9   : > { %774 = vrot.lane.b32.xlu1 %v1496_v23, %s1397_s26 }
 0x2f2   : > { %v516_v2 = vpop.xlane.xlu0 %515 }
 0x2f3   : > { %1374 = vrcp.f32 %v516_v2 }
 0x2f6   : > { %v835_v7 = vpop.permute.xlu0 %834 }
 0x2f7   : > { %v840_v11 = vsel %vm521_vm3, %v835_v7, 0 }
 0x2fd   : > { %v1375_v3 = vpop.eup %1374 }
 0x339   : > { %v559_v4 = vpop.f32.mrb[8].mxu0 }
 0x33a   : > { %v566_v5 = vmul.f32 %v1375_v3, %v559_v4  ;;  %v1289_v6 = vpop.f32.mrb[9].mxu0 }
 0x33b   : > { %v562_v8 = vpop.f32.mrb[10].mxu0 }
 0x33c   : > { %v567_v9 = vpack.c.bf16 %v566_v5, %v566_v5  ;;  %v1290_v10 = vpop.f32.mrb[11].mxu0 }
 0x33e   : > { %1312 = vmatmul.mubr.msk.bf16.vlgmr.msra.gmra.mrb[16].mxu0 %vm461_vm2, %v567_v9 }
 0x33f   : > { %1322 = vmatpush3.bf16.msra.mxu0 %v840_v11  ;;  %1323 = vmatprep.mubr.msk.bf16.mxu0 %vm1395_vm0, %v1394_v1 }
 0x340   : > { %1333 = vmatprep.subr.bf16.mxu0 %v1394_v1 }
 0x365   : > { %v628_v12 = vpop.xlane.xlu1 %627 }
 0x366   : > { %1376 = vrcp.f32 %v628_v12 }
 0x369   : > { %v775_v22 = vpop.permute.xlu1 %774 }
 0x370   : > { %v1377_v13 = vpop.eup %1376 }
 0x3ac   : > { %v673_v14 = vpop.f32.mrb[12].mxu0 }
 0x3ad   : > { %v680_v15 = vmul.f32 %v1377_v13, %v673_v14  ;;  %v1301_v16 = vpop.f32.mrb[13].mxu0 }
 0x3ae   : > { %v676_v17 = vpop.f32.mrb[14].mxu0 }
 0x3af   : > { %v681_v18 = vpack.c.bf16 %v680_v15, %v680_v15  ;;  %v1302_v19 = vpop.f32.mrb[15].mxu0 }
 0x3b1   : > { %1306 = vmatmul.mubr.msk.bf16.vlgmr.msra.gmra.mrb[12].mxu1 %vm461_vm2, %v681_v18 }
 0x3b2   : > { %1316 = vmatpush3.bf16.xpose.msra.mxu1 %v782_v20  ;;  %1317 = vmatprep.mubr.msk.bf16.mxu1 %vm1395_vm0, %v1394_v1  ;;  %v1219_v20 = vld [vmem:[%s1613_s4 + $0x3] ss:$0 sm:$0xff] }
 0x3b3   : > { %1327 = vmatprep.subr.bf16.mxu1 %v1394_v1 }
 0x3b9   : > { %1318 = vmatmul.mubr.msk.bf16.vlgmr.msra.gmra.mrb[16].mxu1 %vm461_vm2, %v775_v22 }
 0x3ba   : > { %1329 = vmatprep.mubr.msk.bf16.mxu1 %vm1395_vm0, %v1394_v1  ;;  %1328 = vmatpush3.bf16.msra.mxu1 %v889_v47 }
 0x3bb   : > { %1339 = vmatprep.subr.bf16.mxu1 %v1394_v1 }
 0x411   : > { %v768_v23 = vpop.f32.mrb[16].mxu0 }
 0x412   : > { %v1313_v24 = vpop.f32.mrb[17].mxu0 }
 0x413   : > { %v771_v25 = vpop.f32.mrb[18].mxu0 }
 0x414   : > { %v1314_v26 = vpop.f32.mrb[19].mxu0 }
 0x484   : > { %v722_v27 = vpop.f32.mrb[12].mxu1 }
 0x485   : > { %v1564_v28 = vadd.f32 %v768_v23, %v722_v27  ;;  %v1307_v29 = vpop.f32.mrb[13].mxu1 }
 0x486   : > { %v725_v31 = vpop.f32.mrb[14].mxu1 }
 0x487   : > { %v1308_v32 = vpop.f32.mrb[15].mxu1 }
 0x48c   : > { %v818_v33 = vpop.f32.mrb[16].mxu1 }
 0x48d   : > { %v1319_v34 = vpop.f32.mrb[17].mxu1  ;;  %v824_v35 = vsel %vm461_vm2, %v818_v33, -inf }
 0x48e   : > { %825 = vmax.xlane.f32.xlu1 %v824_v35  ;;  %v821_v36 = vpop.f32.mrb[18].mxu1 }
 0x48f   : > { %v1320_v37 = vpop.f32.mrb[19].mxu1 }
 0x49f   : > { %934 = vrot.lane.b32.xlu1 %v1494_v21, %s1398_s27  ;;  %v933_v21 = vpop.permute.xlu0 %932 }
 0x51b   : > { %v826_v38 = vpop.xlane.xlu1 %825 }
 0x51c   : > { %v827_v39 = vsub.f32 %v818_v33, %v826_v38 }
 0x51e   : > { %v828_v40 = vmul.f32 1.442695, %v827_v39 }
 0x51f   : > { %v935_v42 = vpop.permute.xlu1 %934 }
 0x520   : > { %1378 = vpow2.f32 %v828_v40  ;;  %v940_v45 = vsel %vm461_vm2, %v935_v42, 0 }
 0x52a   : > { %v1379_v41 = vpop.eup %1378 }
 0x52b   : > { %v830_v43 = vsel %vm461_vm2, %v1379_v41, 0.0  ;;  %v833_v44 = vpack.c.bf16 %v1379_v41, %v1379_v41 }
 0x52c   : > { %831 = vadd.xlane.f32.xlu0 %v830_v43 }
 0x52d   : > { %1324 = vmatmul.mubr.msk.bf16.vlgmr.msra.gmra.mrb[20].mxu0 %vm461_vm2, %v833_v44 }
 0x52e   : > { %1334 = vmatpush3.bf16.xpose.msra.mxu0 %v940_v45  ;;  %1335 = vmatprep.mubr.msk.bf16.mxu0 %vm1395_vm0, %v1394_v1 }
 0x52f   : > { %1345 = vmatprep.subr.bf16.mxu0 %v1394_v1 }
 0x535   : > { %1336 = vmatmul.mubr.msk.bf16.vlgmr.msra.gmra.mrb[24].mxu0 %vm461_vm2, %v933_v21 }
 0x536   : > { %1347 = vmatprep.mubr.msk.bf16.mxu0 %vm1395_vm0, %v1394_v1 }
 0x542   : > { %992 = vrot.lane.b32.xlu0 %v1506_v30, %s1398_s27 }
 0x5b9   : > { %v832_v48 = vpop.xlane.xlu0 %831 }
 0x5ba   : > { %1380 = vrcp.f32 %v832_v48 }
 0x5bd   : > { %v993_v53 = vpop.permute.xlu0 %992 }
 0x5be   : > { %v998_v30 = vsel %vm521_vm3, %v993_v53, 0 }
 0x5c4   : > { %v1381_v49 = vpop.eup %1380 }
 0x600   : > { %v876_v50 = vpop.f32.mrb[20].mxu0 }
 0x601   : > { %v883_v51 = vmul.f32 %v1381_v49, %v876_v50  ;;  %v1325_v52 = vpop.f32.mrb[21].mxu0 }
 0x602   : > { %v879_v54 = vpop.f32.mrb[22].mxu0 }
 0x603   : > { %v884_v55 = vpack.c.bf16 %v883_v51, %v883_v51  ;;  %v1326_v56 = vpop.f32.mrb[23].mxu0 }
 0x605   : > { %1330 = vmatmul.mubr.msk.bf16.vlgmr.msra.gmra.mrb[20].mxu1 %vm461_vm2, %v884_v55 }
 0x606   : > { %1340 = vmatpush3.bf16.msra.mxu1 %v998_v30  ;;  %1341 = vmatprep.mubr.msk.bf16.mxu1 %vm1395_vm0, %v1394_v1  ;;  %v1206_v1 = vld [vmem:[%s1612_s3 + $0x3c] sm:$0xf] }
 0x607   : > { %v1047_v5 = vsel %vm521_vm3, %v1206_v1, 0 }
 0x608   : > { %v976_v57 = vpop.f32.mrb[24].mxu0  ;;  %1346 = vmatpush3.bf16.msra.mxu0 %v1047_v5 }
 0x609   : > { %v1337_v58 = vpop.f32.mrb[25].mxu0  ;;  %v982_v59 = vsel %vm461_vm2, %v976_v57, -inf }
 0x60a   : > { %983 = vmax.xlane.f32.xlu1 %v982_v59  ;;  %v979_v60 = vpop.f32.mrb[26].mxu0 }
 0x60b   : > { %v1338_v61 = vpop.f32.mrb[27].mxu0 }
 0x697   : > { %v984_v62 = vpop.xlane.xlu1 %983 }
 0x698   : > { %v985_v63 = vsub.f32 %v976_v57, %v984_v62 }
 0x69a   : > { %v986_v0 = vmul.f32 1.442695, %v985_v63 }
 0x69c   : > { %1382 = vpow2.f32 %v986_v0 }
 0x6a6   : > { %v1383_v2 = vpop.eup %1382 }
 0x6a7   : > { %v988_v3 = vsel %vm461_vm2, %v1383_v2, 0.0  ;;  %v991_v4 = vpack.c.bf16 %v1383_v2, %v1383_v2 }
 0x6a8   : > { %989 = vadd.xlane.f32.xlu1 %v988_v3 }
 0x6a9   : > { %1342 = vmatmul.mubr.msk.bf16.vlgmr.msra.gmra.mrb[24].mxu1 %vm461_vm2, %v991_v4 }
 0x6d8   : > { %v925_v6 = vpop.f32.mrb[20].mxu1 }
 0x6d9   : > { %v931_v7 = vadd.f32 %v925_v6, %v1564_v28  ;;  %v1331_v8 = vpop.f32.mrb[21].mxu1 }
 0x6da   : > { %v928_v9 = vpop.f32.mrb[22].mxu1 }
 0x6db   : > { %v1332_v10 = vpop.f32.mrb[23].mxu1 }
 0x735   : > { %v990_v11 = vpop.xlane.xlu1 %989 }
 0x736   : > { %1384 = vrcp.f32 %v990_v11 }
 0x740   : > { %v1385_v12 = vpop.eup %1384 }
 0x77c   : > { %v1034_v13 = vpop.f32.mrb[24].mxu1 }
 0x77d   : > { %v1041_v14 = vmul.f32 %v1385_v12, %v1034_v13  ;;  %v1343_v15 = vpop.f32.mrb[25].mxu1 }
 0x77e   : > { %v1037_v16 = vpop.f32.mrb[26].mxu1 }
 0x77f   : > { %v1042_v17 = vpack.c.bf16 %v1041_v14, %v1041_v14  ;;  %v1344_v18 = vpop.f32.mrb[27].mxu1 }
 0x781   : > { %1348 = vmatmul.mubr.msk.bf16.vlgmr.msra.gmra.mrb[28].mxu0 %vm461_vm2, %v1042_v17 }
 0x854   : > { %v1083_v19 = vpop.f32.mrb[28].mxu0 }
 0x855   : > { %v1089_v22 = vadd.f32 %v1083_v19, %v931_v7  ;;  %v1349_v23 = vpop.f32.mrb[29].mxu0 }
 0x856   : > { %v1086_v24 = vpop.f32.mrb[30].mxu0 }
 0x857   : > { %v1095_v25 = vadd.f32 %v1219_v20, %v1089_v22  ;;  %v1350_v26 = vpop.f32.mrb[31].mxu0 }
 0x859   : > { %1096 = vst.msk [vmem:[%s253_s16] sm:$0xff] %vm277_vm1, %v1095_v25 }
 0x85a PF: > { %s15_s18 = sadd.s32 1, %s1392_s18  }
 0x85b   : > { %p12_p4 = scmp.ge.s32.totalorder %s15_s18, 4  }
 0x85d   :  { %14 = sbr.rel (!%p12_p4) target bundleno = 1 (0x1), region = 79 }

</bundles_post_ra>
